<compile_context>
chip_gen: v5e
topology: v5e:2x2
jax: 0.10.0
libtpu: 0.0.40
codegen_flags: <defaults>
</compile_context>

<pallas_src>
import functools
import time

import jax
import jax.numpy as jnp
from jax.experimental import pallas as pl
from jax.experimental.pallas import tpu as pltpu

try:
    from jax.core import Tracer as _Tracer
except Exception:          # pragma: no cover
    try:
        from jax._src.core import Tracer as _Tracer
    except Exception:
        _Tracer = None


def _is_tracer(x):
    return _Tracer is not None and isinstance(x, _Tracer)


LANES = 128


def _pad8(n):
    return ((int(n) + 7) // 8) * 8


def _pick_tile(HW, target=16384):
    """Lane-dim tile length: divides HW and is a multiple of 128 (or the full HW)."""
    if HW % 128 != 0 or HW <= target:
        return HW
    t = target
    while t >= 128:
        if HW % t == 0:
            return t
        t -= 128
    return HW


def _warp_nchw(x, flow):
    """Bilinear backward warp in plain JAX (grid_sample, align_corners=True, border).
    Coordinate math in f32; output stays in x.dtype (used for the occlusion-mask grad
    trick at __init__ time and as the XLA pre-warp fallback)."""
    B, C, H, W = x.shape
    gy, gx = jnp.meshgrid(jnp.arange(H, dtype=jnp.float32),
                          jnp.arange(W, dtype=jnp.float32), indexing="ij")
    f = flow.astype(jnp.float32)
    sx = jnp.clip(gx[None] + f[:, 0], 0.0, W - 1.0)
    sy = jnp.clip(gy[None] + f[:, 1], 0.0, H - 1.0)
    x0 = jnp.floor(sx); x1 = jnp.minimum(x0 + 1.0, W - 1.0)
    y0 = jnp.floor(sy); y1 = jnp.minimum(y0 + 1.0, H - 1.0)
    wx1 = sx - x0; wx0 = 1.0 - wx1
    wy1 = sy - y0; wy0 = 1.0 - wy1
    xf = x.reshape(B, C, H * W)

    def gather(yi, xi):
        idx = (yi * W + xi).astype(jnp.int32).reshape(B, 1, H * W)
        idx = jnp.broadcast_to(idx, (B, C, H * W))
        g = jnp.take_along_axis(xf, idx, axis=2).astype(jnp.float32)
        return g.reshape(B, C, H, W)

    out = (gather(y0, x0) * (wy0 * wx0)[:, None]
           + gather(y0, x1) * (wy0 * wx1)[:, None]
           + gather(y1, x0) * (wy1 * wx0)[:, None]
           + gather(y1, x1) * (wy1 * wx1)[:, None])
    return out.astype(x.dtype)


def _raft_stand_in(target, pred):
    # TODO(synk): the real module runs a pretrained RAFT optical-flow CNN; there is no
    # clean Pallas equivalent, so use a deterministic stand-in
    # (target, pred) -> (B, 2, H, W) pixel flow.
    diff = target - pred
    fx = jnp.tanh(diff.mean(axis=1)) * 2.0
    fy = jnp.tanh((diff * diff).mean(axis=1) - 0.5) * 2.0
    return jnp.stack([fx, fy], axis=1).astype(jnp.float32)


@functools.lru_cache(maxsize=None)
def _make_flow_loss_call(B, C, H, W, T, gather_in_kernel, oracle, use_mask):
    HW = H * W
    NT = HW // T
    pow2_w = (W & (W - 1)) == 0
    shift_w = max(W.bit_length() - 1, 0)

    def _reduce_and_store(tgt, warped, fl, ft, m, floss_ref, closs_ref):
        # flow-loss partial: sum |flow_tgt - flow| over this tile
        fsum = jnp.sum(jnp.abs(ft - fl), keepdims=True)                  # (1, 1)
        # color-loss partial: sum [mask *] |target - warp(pred)| (x0.5 applied outside)
        diff = jnp.abs(tgt - warped)
        if m is not None:
            diff = diff * m
        csum = jnp.sum(diff, keepdims=True)                              # (1, 1)
        floss_ref[0] = jnp.broadcast_to(fsum, (1, LANES))
        closs_ref[0] = jnp.broadcast_to(csum, (1, LANES))

    if gather_in_kernel:
        def kernel(*refs):
            if use_mask:
                (pred_ref, target_ref, flow_ref, ftgt_ref, mask_ref,
                 floss_ref, closs_ref) = refs
            else:
                (pred_ref, target_ref, flow_ref, ftgt_ref,
                 floss_ref, closs_ref) = refs
                mask_ref = None
            t = pl.program_id(1)
            fl = flow_ref[0].astype(jnp.float32)          # (2, T)
            ft = ftgt_ref[0].astype(jnp.float32)          # (2, T)
            wf = ft if oracle else fl                     # warp flow = reuse, no 3rd stream

            # output-pixel coordinates of this HW tile (integer math when W is pow2)
            p = jax.lax.broadcasted_iota(jnp.int32, (1, T), 1) + t * T
            if pow2_w:
                py = (p >> shift_w).astype(jnp.float32)
                px = (p & (W - 1)).astype(jnp.float32)
            else:
                # f32 division of exact integers: exact floor for HW < 2^22; clamp px
                pf = p.astype(jnp.float32)
                py = jnp.floor(pf / float(W))
                px = jnp.clip(pf - py * float(W), 0.0, float(W - 1))

            # grid_sample(align_corners=True, padding_mode=border) sample coords
            sx = jnp.clip(px + wf[0:1, :], 0.0, float(W - 1))
            sy = jnp.clip(py + wf[1:2, :], 0.0, float(H - 1))
            x0 = jnp.floor(sx); x1 = jnp.minimum(x0 + 1.0, float(W - 1))
            y0 = jnp.floor(sy); y1 = jnp.minimum(y0 + 1.0, float(H - 1))
            wx1 = sx - x0; wx0 = 1.0 - wx1
            wy1 = sy - y0; wy0 = 1.0 - wy1

            src = pred_ref[0]                             # (C, HW) native dtype, resident

            def gather(yy, xx):
                idx = (yy * float(W) + xx).astype(jnp.int32)   # (1, T), in-bounds
                idx = jnp.broadcast_to(idx, (C, T))
                return jnp.take_along_axis(
                    src, idx, axis=1, mode="promise_in_bounds").astype(jnp.float32)

            warped = (gather(y0, x0) * (wy0 * wx0) + gather(y0, x1) * (wy0 * wx1)
                      + gather(y1, x0) * (wy1 * wx0) + gather(y1, x1) * (wy1 * wx1))
            tgt = target_ref[0].astype(jnp.float32)
            m = mask_ref[0].astype(jnp.float32) if use_mask else None
            _reduce_and_store(tgt, warped, fl, ft, m, floss_ref, closs_ref)

        in_specs = [
            pl.BlockSpec((1, C, HW), lambda b, t: (b, 0, 0)),   # pred: warp source, resident
            pl.BlockSpec((1, C, T), lambda b, t: (b, 0, t)),    # target (tiled)
            pl.BlockSpec((1, 2, T), lambda b, t: (b, 0, t)),    # flow (tiled)
            pl.BlockSpec((1, 2, T), lambda b, t: (b, 0, t)),    # flow_tgt (tiled)
        ]
        resident_bytes = 2 * _pad8(C) * HW * 4
        tiled_rows = _pad8(C) + 2 * _pad8(2)
        temp_rows = 6 * _pad8(C) + 16 * 8                       # gathers, warped, weights
    else:
        def kernel(*refs):
            if use_mask:
                (warped_ref, target_ref, flow_ref, ftgt_ref, mask_ref,
                 floss_ref, closs_ref) = refs
            else:
                (warped_ref, target_ref, flow_ref, ftgt_ref,
                 floss_ref, closs_ref) = refs
                mask_ref = None
            fl = flow_ref[0].astype(jnp.float32)
            ft = ftgt_ref[0].astype(jnp.float32)
            tgt = target_ref[0].astype(jnp.float32)
            warped = warped_ref[0].astype(jnp.float32)
            m = mask_ref[0].astype(jnp.float32) if use_mask else None
            _reduce_and_store(tgt, warped, fl, ft, m, floss_ref, closs_ref)

        in_specs = [
            pl.BlockSpec((1, C, T), lambda b, t: (b, 0, t)),    # pre-warped pred (tiled)
            pl.BlockSpec((1, C, T), lambda b, t: (b, 0, t)),    # target (tiled)
            pl.BlockSpec((1, 2, T), lambda b, t: (b, 0, t)),    # flow (tiled)
            pl.BlockSpec((1, 2, T), lambda b, t: (b, 0, t)),    # flow_tgt (tiled)
        ]
        resident_bytes = 0
        tiled_rows = 2 * _pad8(C) + 2 * _pad8(2)
        temp_rows = 3 * _pad8(C) + 8 * 8

    if use_mask:
        in_specs.append(pl.BlockSpec((1, 1, T), lambda b, t: (b, 0, t)))
        tiled_rows += _pad8(1)

    # lane-dense per-(batch, tile) partial-sum outputs -> both grid axes "parallel"
    part_spec = pl.BlockSpec((1, 1, LANES), lambda b, t: (b, t, 0))
    part_shape = jax.ShapeDtypeStruct((B, NT, LANES), jnp.float32)

    # scoped-VMEM: padded, double-buffered blocks + in-kernel f32 temporaries,
    # clamped below physical per-core VMEM (v7x: 64 MiB) with headroom.
    est = (resident_bytes + 2 * tiled_rows * T * 4 + temp_rows * T * 4
           + 4 * 2 * LANES * 4 + (2 << 20))
    try:
        cap = int(pltpu.get_tpu_info().vmem_capacity_bytes)
    except Exception:
        cap = 64 * 2 ** 20
    cap = max(cap, 48 * 2 ** 20)
    vmem_limit = int(min(cap - 4 * 2 ** 20, max(est, 32 * 2 ** 20)))

    return pl.pallas_call(
        kernel,
        grid=(B, NT),
        in_specs=in_specs,
        out_specs=[part_spec, part_spec],
        out_shape=[part_shape, part_shape],
        compiler_params=pltpu.CompilerParams(
            dimension_semantics=("parallel", "parallel"),
            vmem_limit_bytes=vmem_limit,
        ),
    )


_KERNEL_MODE = None   # None = not probed; True = in-kernel gather; False = XLA pre-warp


def _bench(fn, reps=2):
    jax.block_until_ready(fn())                      # compile + warm up
    best = float("inf")
    for _ in range(reps):
        t0 = time.perf_counter()
        jax.block_until_ready(fn())
        best = min(best, time.perf_counter() - t0)
    return best


def _flow_loss_pallas(pred, target, flow, flow_tgt, mask, oracle, use_mask,
                      flow_weight, color_weight):
    global _KERNEL_MODE
    B, C, H, W = pred.shape
    HW = H * W
    T = _pick_tile(HW)

    pred_f = pred.reshape(B, C, HW)                  # native dtype over the DMA
    target_f = target.reshape(B, C, HW)
    flow_f = flow.reshape(B, 2, HW).astype(jnp.float32)
    ftgt_f = flow_tgt.reshape(B, 2, HW).astype(jnp.float32)
    mask_f = mask.reshape(B, 1, HW).astype(jnp.float32) if use_mask else None

    def run(gather_in_kernel):
        call = _make_flow_loss_call(B, C, H, W, T, bool(gather_in_kernel),
                                    bool(oracle), bool(use_mask))
        if gather_in_kernel:
            args = [pred_f, target_f, flow_f, ftgt_f]
        else:
            wf = flow_tgt if oracle else flow
            warped = _warp_nchw(pred, wf).reshape(B, C, HW)   # stays in pred.dtype
            args = [warped, target_f, flow_f, ftgt_f]
        if use_mask:
            args.append(mask_f)
        return call(*args)

    concrete = not (_is_tracer(pred) or _is_tracer(target)
                    or _is_tracer(flow) or _is_tracer(flow_tgt))
    if _KERNEL_MODE is None and concrete:
        # one-time probe: pick the *faster* compilable variant, not just a compilable one
        try:
            t_gather = _bench(lambda: run(True))
        except Exception:
            _KERNEL_MODE = False
        else:
            try:
                t_fallback = _bench(lambda: run(False))
                _KERNEL_MODE = bool(t_gather <= t_fallback)
            except Exception:
                _KERNEL_MODE = True
    mode = _KERNEL_MODE if _KERNEL_MODE is not None else False   # safe default in traces

    floss_p, closs_p = run(mode)

    flow_loss = jnp.sum(floss_p[:, :, 0]) / float(B * 2 * H * W)
    # 0.5: |(t/2+.5) - warp(p/2+.5)| == 0.5*|t - warp(p)| since bilinear weights sum to 1
    color_loss = 0.5 * jnp.sum(closs_p[:, :, 0]) / float(B * C * H * W)
    loss = flow_weight * flow_loss + color_weight * color_loss
    return loss, flow_loss, color_loss


class FlowLoss:
    def __init__(self, color_weight=100.0, flow_weight=1.0, oracle=False,
                 target_flow=None, occlusion_masking=False):
        # TODO(synk): the original __init__ instantiates a pretrained RAFT network;
        # replaced by a deterministic stand-in (see _raft_stand_in).
        self.flow_weight = float(flow_weight)
        self.color_weight = float(color_weight)
        self.oracle = bool(oracle)
        self.target_flow = target_flow.astype(jnp.float32)
        self.occlusion_masking = bool(occlusion_masking)

        # Occlusion mask, mirroring the torch.autograd.grad construction.
        def fwd(tf):
            wf = _warp_nchw(tf, tf)
            sel = jax.lax.stop_gradient((tf != wf).astype(tf.dtype))
            return jnp.sum(wf * sel)

        g = jax.grad(fwd)(self.target_flow)
        mocc = 1.0 - (jnp.abs(g).sum(axis=1) != 0).astype(jnp.float32)   # (B,H,W)
        mocc = mocc[:, None]                                             # (B,1,H,W)
        cond = jnp.abs(self.target_flow).sum(axis=1, keepdims=True) != 0
        self.mask_occ = jnp.where(cond, 1.0, mocc)

    def __call__(self, pred, target):
        # normalized copies are only needed by the flow network (stand-in); the kernel
        # works on raw tensors and folds the /2+0.5 into a 0.5 finalize scale.
        target_n = target / 2.0 + 0.5
        pred_n = pred / 2.0 + 0.5
        flow = _raft_stand_in(target_n, pred_n)          # TODO(synk): RAFT stand-in
        flow_tgt = self.target_flow
        mask = self.mask_occ if self.occlusion_masking else None

        loss, flow_loss, color_loss = _flow_loss_pallas(
            pred, target, flow, flow_tgt, mask, self.oracle,
            self.occlusion_masking, self.flow_weight, self.color_weight)

        info = {
            "flow_loss": flow_loss if _is_tracer(flow_loss) else float(flow_loss),
            "color_loss": color_loss if _is_tracer(color_loss) else float(color_loss),
            # TODO(synk): flow_to_image + PIL visualization has no Pallas equivalent.
            "flow_im": None,
        }
        return loss, info


if __name__ == "__main__":
    key = jax.random.PRNGKey(0)
    B, C, H, W = 2, 4, 16, 16
    k1, k2, k3 = jax.random.split(key, 3)
    pred = jax.random.normal(k1, (B, C, H, W), jnp.float32)
    target = jax.random.normal(k2, (B, C, H, W), jnp.float32)
    target_flow = 3.0 * jax.random.normal(k3, (B, 2, H, W), jnp.float32)

    module = FlowLoss(color_weight=100.0, flow_weight=1.0, oracle=False,
                      target_flow=target_flow, occlusion_masking=True)
    loss, info = module(pred, target)
    jax.block_until_ready(loss)
    print("KERNEL_OK")
</pallas_src>

<mosaic_0001>
module attributes {stable_mosaic.version = 11 : i64} {
  func.func @kernel(%arg0: i32, %arg1: i32, %arg2: memref<1x4x256xf32, #tpu.memory_space<vmem>>, %arg3: memref<1x4x256xf32, #tpu.memory_space<vmem>>, %arg4: memref<1x2x256xf32, #tpu.memory_space<vmem>>, %arg5: memref<1x2x256xf32, #tpu.memory_space<vmem>>, %arg6: memref<1x1x256xf32, #tpu.memory_space<vmem>>, %arg7: memref<1x1x128xf32, #tpu.memory_space<vmem>>, %arg8: memref<1x1x128xf32, #tpu.memory_space<vmem>>) attributes {dimension_semantics = [#tpu.dimension_semantics<parallel>, #tpu.dimension_semantics<parallel>], iteration_bounds = array<i64: 2, 1>, scalar_prefetch = 0 : i64, scratch_operands = 0 : i64, tpu.core_type = #tpu.core_type<tc>, window_params = [{transform_indices = @transform_0, window_bounds = array<i64: 1, 4, 256>}, {transform_indices = @transform_1, window_bounds = array<i64: 1, 4, 256>}, {transform_indices = @transform_2, window_bounds = array<i64: 1, 2, 256>}, {transform_indices = @transform_3, window_bounds = array<i64: 1, 2, 256>}, {transform_indices = @transform_4, window_bounds = array<i64: 1, 1, 256>}, {transform_indices = @transform_5, window_bounds = array<i64: 1, 1, 128>}, {transform_indices = @transform_6, window_bounds = array<i64: 1, 1, 128>}]} {
    %c0 = arith.constant 0 : index
    %c0_0 = arith.constant 0 : index
    %c0_1 = arith.constant 0 : index
    %0 = vector.load %arg4[%c0, %c0_0, %c0_1] : memref<1x2x256xf32, #tpu.memory_space<vmem>>, vector<1x2x256xf32>
    %1 = vector.shape_cast %0 : vector<1x2x256xf32> to vector<2x256xf32>
    %c0_2 = arith.constant 0 : index
    %c0_3 = arith.constant 0 : index
    %c0_4 = arith.constant 0 : index
    %2 = vector.load %arg5[%c0_2, %c0_3, %c0_4] : memref<1x2x256xf32, #tpu.memory_space<vmem>>, vector<1x2x256xf32>
    %3 = vector.shape_cast %2 : vector<1x2x256xf32> to vector<2x256xf32>
    %4 = tpu.iota {dimensions = array<i32: 1>} : vector<1x256xi32>
    %c256_i32 = arith.constant 256 : i32
    %5 = arith.muli %arg1, %c256_i32 : i32
    %6 = vector.broadcast %5 : i32 to vector<1x256xi32>
    %7 = arith.addi %4, %6 : vector<1x256xi32>
    %c4_i32 = arith.constant 4 : i32
    %8 = vector.broadcast %c4_i32 : i32 to vector<1x256xi32>
    %9 = arith.shrsi %7, %8 : vector<1x256xi32>
    %10 = arith.sitofp %9 : vector<1x256xi32> to vector<1x256xf32>
    %c15_i32 = arith.constant 15 : i32
    %11 = vector.broadcast %c15_i32 : i32 to vector<1x256xi32>
    %12 = arith.andi %7, %11 : vector<1x256xi32>
    %13 = arith.sitofp %12 : vector<1x256xi32> to vector<1x256xf32>
    %14 = vector.extract_strided_slice %1 {offsets = [0, 0], sizes = [1, 256], strides = [1, 1]} : vector<2x256xf32> to vector<1x256xf32>
    %15 = arith.addf %13, %14 : vector<1x256xf32>
    %cst = arith.constant 0.000000e+00 : f32
    %cst_5 = arith.constant 1.500000e+01 : f32
    %16 = vector.broadcast %cst : f32 to vector<1x256xf32>
    %17 = arith.maximumf %16, %15 : vector<1x256xf32>
    %18 = vector.broadcast %cst_5 : f32 to vector<1x256xf32>
    %19 = arith.minimumf %18, %17 : vector<1x256xf32>
    %20 = vector.extract_strided_slice %1 {offsets = [1, 0], sizes = [1, 256], strides = [1, 1]} : vector<2x256xf32> to vector<1x256xf32>
    %21 = arith.addf %10, %20 : vector<1x256xf32>
    %cst_6 = arith.constant 0.000000e+00 : f32
    %cst_7 = arith.constant 1.500000e+01 : f32
    %22 = vector.broadcast %cst_6 : f32 to vector<1x256xf32>
    %23 = arith.maximumf %22, %21 : vector<1x256xf32>
    %24 = vector.broadcast %cst_7 : f32 to vector<1x256xf32>
    %25 = arith.minimumf %24, %23 : vector<1x256xf32>
    %26 = math.floor %19 : vector<1x256xf32>
    %cst_8 = arith.constant 1.000000e+00 : f32
    %27 = vector.broadcast %cst_8 : f32 to vector<1x256xf32>
    %28 = arith.addf %26, %27 : vector<1x256xf32>
    %cst_9 = arith.constant 1.500000e+01 : f32
    %29 = vector.broadcast %cst_9 : f32 to vector<1x256xf32>
    %30 = arith.minimumf %28, %29 : vector<1x256xf32>
    %31 = math.floor %25 : vector<1x256xf32>
    %cst_10 = arith.constant 1.000000e+00 : f32
    %32 = vector.broadcast %cst_10 : f32 to vector<1x256xf32>
    %33 = arith.addf %31, %32 : vector<1x256xf32>
    %cst_11 = arith.constant 1.500000e+01 : f32
    %34 = vector.broadcast %cst_11 : f32 to vector<1x256xf32>
    %35 = arith.minimumf %33, %34 : vector<1x256xf32>
    %36 = arith.subf %19, %26 : vector<1x256xf32>
    %cst_12 = arith.constant 1.000000e+00 : f32
    %37 = vector.broadcast %cst_12 : f32 to vector<1x256xf32>
    %38 = arith.subf %37, %36 : vector<1x256xf32>
    %39 = arith.subf %25, %31 : vector<1x256xf32>
    %cst_13 = arith.constant 1.000000e+00 : f32
    %40 = vector.broadcast %cst_13 : f32 to vector<1x256xf32>
    %41 = arith.subf %40, %39 : vector<1x256xf32>
    %c0_14 = arith.constant 0 : index
    %c0_15 = arith.constant 0 : index
    %c0_16 = arith.constant 0 : index
    %42 = vector.load %arg2[%c0_14, %c0_15, %c0_16] : memref<1x4x256xf32, #tpu.memory_space<vmem>>, vector<1x4x256xf32>
    %43 = vector.shape_cast %42 : vector<1x4x256xf32> to vector<4x256xf32>
    %cst_17 = arith.constant 1.600000e+01 : f32
    %44 = vector.broadcast %cst_17 : f32 to vector<1x256xf32>
    %45 = arith.mulf %31, %44 : vector<1x256xf32>
    %46 = arith.addf %45, %26 : vector<1x256xf32>
    %47 = arith.fptosi %46 : vector<1x256xf32> to vector<1x256xi32>
    %48 = vector.shape_cast %47 : vector<1x256xi32> to vector<1x256xi32>
    %49 = vector.broadcast %48 : vector<1x256xi32> to vector<4x256xi32>
    %50 = vector.shape_cast %49 : vector<4x256xi32> to vector<4x256x1xi32>
    %51 = vector.shape_cast %50 : vector<4x256x1xi32> to vector<4x256xi32>
    %52 = tpu.dynamic_gather %43[%51] in [1] : vector<4x256xf32>, vector<4x256xi32> -> vector<4x256xf32>
    %53 = arith.mulf %41, %38 : vector<1x256xf32>
    %54 = vector.broadcast %53 : vector<1x256xf32> to vector<4x256xf32>
    %55 = arith.mulf %52, %54 : vector<4x256xf32>
    %cst_18 = arith.constant 1.600000e+01 : f32
    %56 = vector.broadcast %cst_18 : f32 to vector<1x256xf32>
    %57 = arith.mulf %31, %56 : vector<1x256xf32>
    %58 = arith.addf %57, %30 : vector<1x256xf32>
    %59 = arith.fptosi %58 : vector<1x256xf32> to vector<1x256xi32>
    %60 = vector.shape_cast %59 : vector<1x256xi32> to vector<1x256xi32>
    %61 = vector.broadcast %60 : vector<1x256xi32> to vector<4x256xi32>
    %62 = vector.shape_cast %61 : vector<4x256xi32> to vector<4x256x1xi32>
    %63 = vector.shape_cast %62 : vector<4x256x1xi32> to vector<4x256xi32>
    %64 = tpu.dynamic_gather %43[%63] in [1] : vector<4x256xf32>, vector<4x256xi32> -> vector<4x256xf32>
    %65 = arith.mulf %41, %36 : vector<1x256xf32>
    %66 = vector.broadcast %65 : vector<1x256xf32> to vector<4x256xf32>
    %67 = arith.mulf %64, %66 : vector<4x256xf32>
    %68 = arith.addf %55, %67 : vector<4x256xf32>
    %cst_19 = arith.constant 1.600000e+01 : f32
    %69 = vector.broadcast %cst_19 : f32 to vector<1x256xf32>
    %70 = arith.mulf %35, %69 : vector<1x256xf32>
    %71 = arith.addf %70, %26 : vector<1x256xf32>
    %72 = arith.fptosi %71 : vector<1x256xf32> to vector<1x256xi32>
    %73 = vector.shape_cast %72 : vector<1x256xi32> to vector<1x256xi32>
    %74 = vector.broadcast %73 : vector<1x256xi32> to vector<4x256xi32>
    %75 = vector.shape_cast %74 : vector<4x256xi32> to vector<4x256x1xi32>
    %76 = vector.shape_cast %75 : vector<4x256x1xi32> to vector<4x256xi32>
    %77 = tpu.dynamic_gather %43[%76] in [1] : vector<4x256xf32>, vector<4x256xi32> -> vector<4x256xf32>
    %78 = arith.mulf %39, %38 : vector<1x256xf32>
    %79 = vector.broadcast %78 : vector<1x256xf32> to vector<4x256xf32>
    %80 = arith.mulf %77, %79 : vector<4x256xf32>
    %81 = arith.addf %68, %80 : vector<4x256xf32>
    %cst_20 = arith.constant 1.600000e+01 : f32
    %82 = vector.broadcast %cst_20 : f32 to vector<1x256xf32>
    %83 = arith.mulf %35, %82 : vector<1x256xf32>
    %84 = arith.addf %83, %30 : vector<1x256xf32>
    %85 = arith.fptosi %84 : vector<1x256xf32> to vector<1x256xi32>
    %86 = vector.shape_cast %85 : vector<1x256xi32> to vector<1x256xi32>
    %87 = vector.broadcast %86 : vector<1x256xi32> to vector<4x256xi32>
    %88 = vector.shape_cast %87 : vector<4x256xi32> to vector<4x256x1xi32>
    %89 = vector.shape_cast %88 : vector<4x256x1xi32> to vector<4x256xi32>
    %90 = tpu.dynamic_gather %43[%89] in [1] : vector<4x256xf32>, vector<4x256xi32> -> vector<4x256xf32>
    %91 = arith.mulf %39, %36 : vector<1x256xf32>
    %92 = vector.broadcast %91 : vector<1x256xf32> to vector<4x256xf32>
    %93 = arith.mulf %90, %92 : vector<4x256xf32>
    %94 = arith.addf %81, %93 : vector<4x256xf32>
    %c0_21 = arith.constant 0 : index
    %c0_22 = arith.constant 0 : index
    %c0_23 = arith.constant 0 : index
    %95 = vector.load %arg3[%c0_21, %c0_22, %c0_23] : memref<1x4x256xf32, #tpu.memory_space<vmem>>, vector<1x4x256xf32>
    %96 = vector.shape_cast %95 : vector<1x4x256xf32> to vector<4x256xf32>
    %c0_24 = arith.constant 0 : index
    %c0_25 = arith.constant 0 : index
    %c0_26 = arith.constant 0 : index
    %97 = vector.load %arg6[%c0_24, %c0_25, %c0_26] : memref<1x1x256xf32, #tpu.memory_space<vmem>>, vector<1x1x256xf32>
    %98 = vector.shape_cast %97 : vector<1x1x256xf32> to vector<1x256xf32>
    %99 = arith.subf %3, %1 : vector<2x256xf32>
    %100 = math.absf %99 : vector<2x256xf32>
    %101 = vector.shape_cast %100 : vector<2x256xf32> to vector<1x2x256xf32>
    %cst_27 = arith.constant dense<0.000000e+00> : vector<1xf32>
    %102 = vector.multi_reduction <add>, %101, %cst_27 [1, 2] : vector<1x2x256xf32> to vector<1xf32>
    %103 = vector.shape_cast %102 : vector<1xf32> to vector<1x1x1xf32>
    %104 = vector.extract %103[0, 0, 0] : f32 from vector<1x1x1xf32>
    %105 = vector.broadcast %104 : f32 to vector<1x1xf32>
    %106 = arith.subf %96, %94 : vector<4x256xf32>
    %107 = math.absf %106 : vector<4x256xf32>
    %108 = vector.broadcast %98 : vector<1x256xf32> to vector<4x256xf32>
    %109 = arith.mulf %107, %108 : vector<4x256xf32>
    %110 = vector.shape_cast %109 : vector<4x256xf32> to vector<1x4x256xf32>
    %cst_28 = arith.constant dense<0.000000e+00> : vector<1xf32>
    %111 = vector.multi_reduction <add>, %110, %cst_28 [1, 2] : vector<1x4x256xf32> to vector<1xf32>
    %112 = vector.shape_cast %111 : vector<1xf32> to vector<1x1x1xf32>
    %113 = vector.extract %112[0, 0, 0] : f32 from vector<1x1x1xf32>
    %114 = vector.broadcast %113 : f32 to vector<1x1xf32>
    %115 = vector.shape_cast %105 : vector<1x1xf32> to vector<1x1xf32>
    %116 = vector.broadcast %115 : vector<1x1xf32> to vector<1x128xf32>
    %c0_29 = arith.constant 0 : index
    %c0_30 = arith.constant 0 : index
    %c0_31 = arith.constant 0 : index
    %117 = vector.load %arg7[%c0_29, %c0_30, %c0_31] : memref<1x1x128xf32, #tpu.memory_space<vmem>>, vector<1x1x128xf32>
    %118 = vector.shape_cast %117 : vector<1x1x128xf32> to vector<1x128xf32>
    %119 = vector.shape_cast %116 : vector<1x128xf32> to vector<1x1x128xf32>
    tpu.vector_store %arg7[%c0_29, %c0_30, %c0_31], %119 {strides = array<i32>} : memref<1x1x128xf32, #tpu.memory_space<vmem>>, vector<1x1x128xf32>,
    %120 = vector.shape_cast %114 : vector<1x1xf32> to vector<1x1xf32>
    %121 = vector.broadcast %120 : vector<1x1xf32> to vector<1x128xf32>
    %c0_32 = arith.constant 0 : index
    %c0_33 = arith.constant 0 : index
    %c0_34 = arith.constant 0 : index
    %122 = vector.load %arg8[%c0_32, %c0_33, %c0_34] : memref<1x1x128xf32, #tpu.memory_space<vmem>>, vector<1x1x128xf32>
    %123 = vector.shape_cast %122 : vector<1x1x128xf32> to vector<1x128xf32>
    %124 = vector.shape_cast %121 : vector<1x128xf32> to vector<1x1x128xf32>
    tpu.vector_store %arg8[%c0_32, %c0_33, %c0_34], %124 {strides = array<i32>} : memref<1x1x128xf32, #tpu.memory_space<vmem>>, vector<1x1x128xf32>,
    return
  }
  func.func @transform_0(%arg0: i32, %arg1: i32) -> (i32, i32, i32) {
    %c0_i32 = arith.constant 0 : i32
    %c0_i32_0 = arith.constant 0 : i32
    %c0_i32_1 = arith.constant 0 : i32
    return %arg0, %c0_i32, %c0_i32_0 : i32, i32, i32
  }
  func.func @transform_1(%arg0: i32, %arg1: i32) -> (i32, i32, i32) {
    %c0_i32 = arith.constant 0 : i32
    %c0_i32_0 = arith.constant 0 : i32
    return %arg0, %c0_i32, %arg1 : i32, i32, i32
  }
  func.func @transform_2(%arg0: i32, %arg1: i32) -> (i32, i32, i32) {
    %c0_i32 = arith.constant 0 : i32
    %c0_i32_0 = arith.constant 0 : i32
    return %arg0, %c0_i32, %arg1 : i32, i32, i32
  }
  func.func @transform_3(%arg0: i32, %arg1: i32) -> (i32, i32, i32) {
    %c0_i32 = arith.constant 0 : i32
    %c0_i32_0 = arith.constant 0 : i32
    return %arg0, %c0_i32, %arg1 : i32, i32, i32
  }
  func.func @transform_4(%arg0: i32, %arg1: i32) -> (i32, i32, i32) {
    %c0_i32 = arith.constant 0 : i32
    %c0_i32_0 = arith.constant 0 : i32
    return %arg0, %c0_i32, %arg1 : i32, i32, i32
  }
  func.func @transform_5(%arg0: i32, %arg1: i32) -> (i32, i32, i32) {
    %c0_i32 = arith.constant 0 : i32
    %c0_i32_0 = arith.constant 0 : i32
    return %arg0, %arg1, %c0_i32 : i32, i32, i32
  }
  func.func @transform_6(%arg0: i32, %arg1: i32) -> (i32, i32, i32) {
    %c0_i32 = arith.constant 0 : i32
    %c0_i32_0 = arith.constant 0 : i32
    return %arg0, %arg1, %c0_i32 : i32, i32, i32
  }
}

module attributes {stable_mosaic.version = 11 : i64} {
  func.func @kernel(%arg0: i32, %arg1: i32, %arg2: memref<1x4x256xf32, #tpu.memory_space<vmem>>, %arg3: memref<1x4x256xf32, #tpu.memory_space<vmem>>, %arg4: memref<1x2x256xf32, #tpu.memory_space<vmem>>, %arg5: memref<1x2x256xf32, #tpu.memory_space<vmem>>, %arg6: memref<1x1x256xf32, #tpu.memory_space<vmem>>, %arg7: memref<1x1x128xf32, #tpu.memory_space<vmem>>, %arg8: memref<1x1x128xf32, #tpu.memory_space<vmem>>) attributes {dimension_semantics = [#tpu.dimension_semantics<parallel>, #tpu.dimension_semantics<parallel>], iteration_bounds = array<i64: 2, 1>, scalar_prefetch = 0 : i64, scratch_operands = 0 : i64, tpu.core_type = #tpu.core_type<tc>, window_params = [{transform_indices = @transform_0, window_bounds = array<i64: 1, 4, 256>}, {transform_indices = @transform_1, window_bounds = array<i64: 1, 4, 256>}, {transform_indices = @transform_2, window_bounds = array<i64: 1, 2, 256>}, {transform_indices = @transform_3, window_bounds = array<i64: 1, 2, 256>}, {transform_indices = @transform_4, window_bounds = array<i64: 1, 1, 256>}, {transform_indices = @transform_5, window_bounds = array<i64: 1, 1, 128>}, {transform_indices = @transform_6, window_bounds = array<i64: 1, 1, 128>}]} {
    %c0 = arith.constant 0 : index
    %c0_0 = arith.constant 0 : index
    %c0_1 = arith.constant 0 : index
    %0 = vector.load %arg4[%c0, %c0_0, %c0_1] : memref<1x2x256xf32, #tpu.memory_space<vmem>>, vector<1x2x256xf32>
    %1 = vector.shape_cast %0 : vector<1x2x256xf32> to vector<2x256xf32>
    %c0_2 = arith.constant 0 : index
    %c0_3 = arith.constant 0 : index
    %c0_4 = arith.constant 0 : index
    %2 = vector.load %arg5[%c0_2, %c0_3, %c0_4] : memref<1x2x256xf32, #tpu.memory_space<vmem>>, vector<1x2x256xf32>
    %3 = vector.shape_cast %2 : vector<1x2x256xf32> to vector<2x256xf32>
    %c0_5 = arith.constant 0 : index
    %c0_6 = arith.constant 0 : index
    %c0_7 = arith.constant 0 : index
    %4 = vector.load %arg3[%c0_5, %c0_6, %c0_7] : memref<1x4x256xf32, #tpu.memory_space<vmem>>, vector<1x4x256xf32>
    %5 = vector.shape_cast %4 : vector<1x4x256xf32> to vector<4x256xf32>
    %c0_8 = arith.constant 0 : index
    %c0_9 = arith.constant 0 : index
    %c0_10 = arith.constant 0 : index
    %6 = vector.load %arg2[%c0_8, %c0_9, %c0_10] : memref<1x4x256xf32, #tpu.memory_space<vmem>>, vector<1x4x256xf32>
    %7 = vector.shape_cast %6 : vector<1x4x256xf32> to vector<4x256xf32>
    %c0_11 = arith.constant 0 : index
    %c0_12 = arith.constant 0 : index
    %c0_13 = arith.constant 0 : index
    %8 = vector.load %arg6[%c0_11, %c0_12, %c0_13] : memref<1x1x256xf32, #tpu.memory_space<vmem>>, vector<1x1x256xf32>
    %9 = vector.shape_cast %8 : vector<1x1x256xf32> to vector<1x256xf32>
    %10 = arith.subf %3, %1 : vector<2x256xf32>
    %11 = math.absf %10 : vector<2x256xf32>
    %12 = vector.shape_cast %11 : vector<2x256xf32> to vector<1x2x256xf32>
    %cst = arith.constant dense<0.000000e+00> : vector<1xf32>
    %13 = vector.multi_reduction <add>, %12, %cst [1, 2] : vector<1x2x256xf32> to vector<1xf32>
    %14 = vector.shape_cast %13 : vector<1xf32> to vector<1x1x1xf32>
    %15 = vector.extract %14[0, 0, 0] : f32 from vector<1x1x1xf32>
    %16 = vector.broadcast %15 : f32 to vector<1x1xf32>
    %17 = arith.subf %5, %7 : vector<4x256xf32>
    %18 = math.absf %17 : vector<4x256xf32>
    %19 = vector.broadcast %9 : vector<1x256xf32> to vector<4x256xf32>
    %20 = arith.mulf %18, %19 : vector<4x256xf32>
    %21 = vector.shape_cast %20 : vector<4x256xf32> to vector<1x4x256xf32>
    %cst_14 = arith.constant dense<0.000000e+00> : vector<1xf32>
    %22 = vector.multi_reduction <add>, %21, %cst_14 [1, 2] : vector<1x4x256xf32> to vector<1xf32>
    %23 = vector.shape_cast %22 : vector<1xf32> to vector<1x1x1xf32>
    %24 = vector.extract %23[0, 0, 0] : f32 from vector<1x1x1xf32>
    %25 = vector.broadcast %24 : f32 to vector<1x1xf32>
    %26 = vector.shape_cast %16 : vector<1x1xf32> to vector<1x1xf32>
    %27 = vector.broadcast %26 : vector<1x1xf32> to vector<1x128xf32>
    %c0_15 = arith.constant 0 : index
    %c0_16 = arith.constant 0 : index
    %c0_17 = arith.constant 0 : index
    %28 = vector.load %arg7[%c0_15, %c0_16, %c0_17] : memref<1x1x128xf32, #tpu.memory_space<vmem>>, vector<1x1x128xf32>
    %29 = vector.shape_cast %28 : vector<1x1x128xf32> to vector<1x128xf32>
    %30 = vector.shape_cast %27 : vector<1x128xf32> to vector<1x1x128xf32>
    tpu.vector_store %arg7[%c0_15, %c0_16, %c0_17], %30 {strides = array<i32>} : memref<1x1x128xf32, #tpu.memory_space<vmem>>, vector<1x1x128xf32>,
    %31 = vector.shape_cast %25 : vector<1x1xf32> to vector<1x1xf32>
    %32 = vector.broadcast %31 : vector<1x1xf32> to vector<1x128xf32>
    %c0_18 = arith.constant 0 : index
    %c0_19 = arith.constant 0 : index
    %c0_20 = arith.constant 0 : index
    %33 = vector.load %arg8[%c0_18, %c0_19, %c0_20] : memref<1x1x128xf32, #tpu.memory_space<vmem>>, vector<1x1x128xf32>
    %34 = vector.shape_cast %33 : vector<1x1x128xf32> to vector<1x128xf32>
    %35 = vector.shape_cast %32 : vector<1x128xf32> to vector<1x1x128xf32>
    tpu.vector_store %arg8[%c0_18, %c0_19, %c0_20], %35 {strides = array<i32>} : memref<1x1x128xf32, #tpu.memory_space<vmem>>, vector<1x1x128xf32>,
    return
  }
  func.func @transform_0(%arg0: i32, %arg1: i32) -> (i32, i32, i32) {
    %c0_i32 = arith.constant 0 : i32
    %c0_i32_0 = arith.constant 0 : i32
    return %arg0, %c0_i32, %arg1 : i32, i32, i32
  }
  func.func @transform_1(%arg0: i32, %arg1: i32) -> (i32, i32, i32) {
    %c0_i32 = arith.constant 0 : i32
    %c0_i32_0 = arith.constant 0 : i32
    return %arg0, %c0_i32, %arg1 : i32, i32, i32
  }
  func.func @transform_2(%arg0: i32, %arg1: i32) -> (i32, i32, i32) {
    %c0_i32 = arith.constant 0 : i32
    %c0_i32_0 = arith.constant 0 : i32
    return %arg0, %c0_i32, %arg1 : i32, i32, i32
  }
  func.func @transform_3(%arg0: i32, %arg1: i32) -> (i32, i32, i32) {
    %c0_i32 = arith.constant 0 : i32
    %c0_i32_0 = arith.constant 0 : i32
    return %arg0, %c0_i32, %arg1 : i32, i32, i32
  }
  func.func @transform_4(%arg0: i32, %arg1: i32) -> (i32, i32, i32) {
    %c0_i32 = arith.constant 0 : i32
    %c0_i32_0 = arith.constant 0 : i32
    return %arg0, %c0_i32, %arg1 : i32, i32, i32
  }
  func.func @transform_5(%arg0: i32, %arg1: i32) -> (i32, i32, i32) {
    %c0_i32 = arith.constant 0 : i32
    %c0_i32_0 = arith.constant 0 : i32
    return %arg0, %arg1, %c0_i32 : i32, i32, i32
  }
  func.func @transform_6(%arg0: i32, %arg1: i32) -> (i32, i32, i32) {
    %c0_i32 = arith.constant 0 : i32
    %c0_i32_0 = arith.constant 0 : i32
    return %arg0, %arg1, %c0_i32 : i32, i32, i32
  }
}

</mosaic_0001>

<bundles_post_ra>
// kernel: tpu_custom_call.1
= control target key start
LH: loop header
LB: loop body
LE: loop exit
PB: predicated region body
PF: predicated region fallthrough
CT: control target
= control target key end

     0   :  { %s1397_s0 = inlined_call_operand.hbm [shape: f32[2,4,256], index: 0, kind: input, shape index: {}]   ;;  %s1398_s1 = inlined_call_operand.hbm [shape: f32[2,4,256], index: 1, kind: input, shape index: {}]   ;;  %s1399_s2 = inlined_call_operand.hbm [shape: f32[2,2,256], index: 2, kind: input, shape index: {}]   ;;  %s1400_s3 = inlined_call_operand.hbm [shape: f32[2,2,256], index: 3, kind: input, shape index: {}]   ;;  %s1401_s4 = inlined_call_operand.hbm [shape: f32[2,1,256], index: 4, kind: input, shape index: {}]   ;;  %s1402_s5 = inlined_call_operand.hbm [shape: f32[2,1,128], index: 5, kind: output, shape index: {0}]   ;;  %s1403_s6 = inlined_call_operand.hbm [shape: f32[2,1,128], index: 6, kind: output, shape index: {1}]  }
   0x1   :  { %1411 = sst [smem:[#allocation25_spill]] %s1398_s1 }
   0x2   :  { %1412 = sst [smem:[#allocation26_spill]] %s1399_s2 }
   0x3   :  { %1413 = sst [smem:[#allocation27_spill]] %s1403_s6 }
   0x4   :  { %12 = vsyncpa [#allocation3], 0 }
   0x5   :  { %14 = vsyncpa [#allocation3 + $0x1], 0 }
   0x6   :  { %15 = vsyncpa [#allocation6], 0 }
   0x7   :  { %17 = vsyncpa [#allocation6 + $0x1], 0 }
   0x8   :  { %18 = vsyncpa [#allocation9], 0 }
   0x9   :  { %20 = vsyncpa [#allocation9 + $0x1], 0 }
   0xa   :  { %21 = vsyncpa [#allocation4], 0 }
   0xb   :  { %23 = vsyncpa [#allocation4 + $0x1], 0 }
   0xc   :  { %24 = vsyncpa [#allocation13], 0 }
   0xd   :  { %26 = vsyncpa [#allocation13 + $0x1], 0  ;;  %s1197_s21 = smov 0   ;;  %s1199_s22 = smov 0  }
   0xe   :  { %s1201_s23 = smov 0   ;;  %s1203_s24 = smov 0  }
   0xf   :  { %s1205_s25 = smov 0   ;;  %s1207_s26 = smov 0  }
  0x10 LB: > { %1414 = sst [smem:[#allocation19_spill]] %s1140_s21  ;;  %s1228_s27 = sadd.s32 4294967295, %s1160_s26   ;;  %s1160_s26 = sphi %s1207_s26, %s32_s26   ;;  %s1156_s25 = sphi %s1205_s25, %s1438_s25   ;;  %s1152_s24 = sphi %s1203_s24, %s1437_s24   ;;  %s1148_s23 = sphi %s1201_s23, %s1433_s23   ;;  %s1144_s22 = sphi %s1199_s22, %s1436_s22   ;;  %s1140_s21 = sphi %s1197_s21, %s1435_s21  }
  0x11   : > { %1415 = sst [smem:[#allocation20_spill]] %s1148_s23  ;;  %s768_s28 = sadd.s32 4294967294, %s1160_s26  }
  0x12   : > { %1416 = sst [smem:[#allocation21_spill]] %s1160_s26  ;;  %s44_s29 = sadd.s32 1, %s1156_s25 }
  0x13   : > { %s53_s30 = sadd.s32 1, %s1148_s23  ;;  %p46_p0 = scmp.ge.s32.totalorder %s44_s29, 2 }
  0x14   : > { %p60_p1 = scmp.ne.s32.totalorder %s1148_s23, %s1144_s22  ;;  %p61_p2 = scmp.eq.s32.totalorder %s1160_s26, 0 }
  0x15   : > { %p66_p3 = scmp.ne.s32.totalorder %s1144_s22, %s1140_s21  ;;  %s1440_s29 = smov (%p46_p0, %s44_s29), 0 }
  0x16   : > { %1417 = sst [smem:[#allocation22_spill]] %s1440_s29  ;;  %p1240_p4 = por %p61_p2, %p60_p1 }
  0x17   : > { %p67_p5 = scmp.eq.s32.totalorder %s1228_s27, 0  ;;  %s48_s8 = ssub.s32 %s1156_s25, %s1440_s29 }
  0x18   : > { %p204_p6 = scmp.eq.s32.totalorder %s1228_s27, 1  ;;  %p51_p7 = scmp.eq.s32.totalorder %s48_s8, 0 }
  0x19   : > { %p1248_p8 = por %p67_p5, %p66_p3  ;;  %p210_p10 = scmp.eq.s32.totalorder %s768_s28, 1 }
  0x1a   : > { %p1252_p9 = por %p204_p6, %p60_p1  ;;  %p770_p12 = scmp.ge.s32.totalorder %s1160_s26, 2 }
  0x1b   : > { %s1257_s11 = scalar_select %p51_p7, %s1148_s23, %s53_s30  }
  0x1c   : > { %p1259_p11 = por %p210_p10, %p66_p3  ;;  %p838_p13 = scmp.lt.s32.totalorder %s1160_s26, 2 }
  0x1d   : > { %1421 = sst [smem:[#allocation23_spill]] %s1257_s11  ;;  %s1266_s13 = sand.u32 1, %s1148_s23  }
  0x1e   : > { %s1422_s12 = scalar_select %p1259_p11, 1, 0 }
  0x1f   : > { %s771_s14 = sshll.u32 %s1266_s13, 3  ;;  %s793_s15 = sshll.u32 %s1156_s25, 3 }
  0x20   : > { %1423 = sst [smem:[#allocation24_spill]] %s1422_s12  ;;  %p1272_p0 = pnand %p838_p13, %p1240_p4 }
  0x21   : > { %s280_s17 = sand.u32 1, %s1160_s26   ;;  %s1425_s1 = sld [smem:[#allocation25_spill]] }
  0x22   : > { %s284_s30 = scalar_lea.vmem [#allocation5], %s771_s14  ;;  %s1280_s29 = scalar_lea.sflag [#allocation6], %s280_s17 }
  0x23   : > { %s295_s8 = sshll.u32 %s284_s30, 4  ;;  %p785_p1 = scmp.ge.s32.totalorder %s1160_s26, 1  ;;  %s296_s8 = int_to_ptr.vmem [resolvable:$true] %s295_s8 }
  0x24   : > { %p365_p2 = scmp.lt.s32.totalorder %s1160_s26, 3  ;;  %s777_s7 = sshll.u32 %s1266_s13, 2 }
  0x25   : > { %s795_s11 = sshll.u32 %s1156_s25, 2  ;;  %s1427_s2 = sld [smem:[#allocation26_spill]] }
  0x26   : > { %p1289_p3 = pnand %p785_p1, %p365_p2  ;;  %s335_s12 = scalar_lea.hbm %s1400_s3, %s795_s11 }
  0x27   : > { %s291_s20 = scalar_lea.hbm %s1425_s1, %s793_s15  ;;  %s337_s21 = sshll.u32 %s335_s12, 4  ;;  %s338_s21 = int_to_ptr.hbm [resolvable:$true] %s337_s21 }
  0x28   : > { %s293_s28 = sshll.u32 %s291_s20, 4  ;;  %s325_s26 = scalar_lea.sflag [#allocation9], %s280_s17  ;;  %s294_s28 = int_to_ptr.hbm [resolvable:$true] %s293_s28 }
  0x29   : > { %821 = dma.hbm_to_vmem [thread:$0]  (!%p1272_p0), %s294_s28, 128, %s296_s8, %s1280_s29  }
  0x2a   : > { %s328_s28 = scalar_lea.vmem [#allocation8], %s777_s7  ;;  %s269_s19 = scalar_lea.hbm %s1397_s0, %s793_s15 }
  0x2b   : > { %s313_s20 = scalar_lea.hbm %s1427_s2, %s795_s11  ;;  %s339_s8 = sshll.u32 %s328_s28, 4  ;;  %s340_s8 = int_to_ptr.vmem [resolvable:$true] %s339_s8 }
  0x2c   : > { %827 = dma.hbm_to_vmem [thread:$0]  (!%p1272_p0), %s338_s21, 64, %s340_s8, %s325_s26  }
  0x2d   : > { %s262_s1 = scalar_lea.vmem [#allocation2], %s771_s14  ;;  %s271_s11 = sshll.u32 %s269_s19, 4  ;;  %s272_s11 = int_to_ptr.hbm [resolvable:$true] %s271_s11 }
  0x2e   : > { %s273_s30 = sshll.u32 %s262_s1, 4  ;;  %s315_s12 = sshll.u32 %s313_s20, 4  ;;  %s274_s30 = int_to_ptr.vmem [resolvable:$true] %s273_s30  ;;  %s316_s12 = int_to_ptr.hbm [resolvable:$true] %s315_s12 }
  0x2f   : > { %s259_s28 = scalar_lea.sflag [#allocation3], %s1266_s13  ;;  %s306_s17 = scalar_lea.vmem [#allocation7], %s777_s7 }
  0x30   : > { %818 = dma.hbm_to_vmem [thread:$0]  (!%p1272_p0), %s272_s11, 128, %s274_s30, %s259_s28  }
  0x31   : > { %s317_s2 = sshll.u32 %s306_s17, 4  ;;  %s783_s21 = sshll.u32 %s1266_s13, 1  ;;  %s318_s2 = int_to_ptr.vmem [resolvable:$true] %s317_s2 }
  0x32   : > { %824 = dma.hbm_to_vmem [thread:$0]  (!%p1272_p0), %s316_s12, 64, %s318_s2, %s1280_s29  }
  0x33   : > { %s784_s6 = sshll.u32 %s1156_s25, 1  ;;  %s350_s18 = scalar_lea.vmem [#allocation10], %s783_s21 }
  0x34   : > { %s356_s14 = scalar_lea.hbm %s1401_s4, %s784_s6  ;;  %s360_s19 = sshll.u32 %s350_s18, 4  ;;  %s361_s19 = int_to_ptr.vmem [resolvable:$true] %s360_s19 }
  0x35   : > { %s358_s1 = sshll.u32 %s356_s14, 4  ;;  %369 = sbr.rel (%p1289_p3) target bundleno = 277 (0x115), region = 40  ;;  %s359_s1 = int_to_ptr.hbm [resolvable:$true] %s358_s1 }
  0x36   : > { %830 = dma.hbm_to_vmem [thread:$0]  (!%p1272_p0), %s359_s1, 32, %s361_s19, %s325_s26  }
  0x37   : > { %s1320_s13 = sand.u32 (!%p1289_p3), 1, %s1144_s22  }
  0x38   : > { %s786_s2 = sshll.u32 (!%p1289_p3), %s1320_s13, 3  ;;  %s372_s29 = scalar_lea.sflag (!%p1289_p3), [#allocation3], %s1320_s13 }
  0x39   : > { %s375_s7 = scalar_lea.vmem (!%p1289_p3), [#allocation2], %s786_s2 }
  0x3a   : > { %1119 = dma.done.wait (%p1248_p8), %s372_s29, 128  }
  0x3b   : > { %1121 = vsyncadd (%p1248_p8), %s372_s29, 4294967168  ;;  %s381_s26 = sand.u32 1, %s1228_s27   ;;  %s385_s23 = scalar_lea.vmem [#allocation5], %s786_s2 }
  0x3c   : > { %s382_s16 = scalar_lea.sflag [#allocation6], %s381_s26 }
  0x3d   : > { %1123 = dma.done.wait (%p1248_p8), %s382_s16, 192  }
  0x3e   : > { %1125 = vsyncadd (%p1248_p8), %s382_s16, 4294967104  ;;  %s788_s20 = sshll.u32 %s1320_s13, 2  ;;  %s402_s11 = scalar_lea.sflag [#allocation9], %s381_s26 }
  0x3f   : > { %s395_s30 = scalar_lea.vmem [#allocation7], %s788_s20  ;;  %s405_s12 = scalar_lea.vmem [#allocation8], %s788_s20 }
  0x40   : > { %1127 = dma.done.wait (%p1248_p8), %s402_s11, 96  }
  0x41   : > { %1129 = vsyncadd (%p1248_p8), %s402_s11, 4294967200  ;;  %s790_s27 = sshll.u32 %s1320_s13, 1  ;;  %v473_v0 = vld [vmem:[%s395_s30] sm:$0xf]  ;;  %v474_v1 = vld [vmem:[%s405_s12] sm:$0xf]  ;;  %s545_s21 = scalar_lea.hbm %s1402_s5, %s1152_s24 }
  0x42   : > { %v475_v2 = vld [vmem:[%s385_s23] sm:$0xff]  ;;  %v478_v3 = vsub.f32 %v474_v1, %v473_v0  ;;  %v476_v4 = vld [vmem:[%s375_s7] sm:$0xff]  ;;  %s415_s28 = scalar_lea.vmem [#allocation10], %s790_s27  ;;  %vm505_vm0 = vcmask 1043456   ;;  %vm486_vm1 = vcmask 1041408   ;;  %s461_s6 = scalar_lea.vmem [#allocation11], %s1320_s13 }
  0x43   : > { %v477_v5 = vld [vmem:[%s415_s28] sm:$0x3]  ;;  %v499_v6 = vsub.f32 %v475_v2, %v476_v4  ;;  %s547_s8 = sshll.u32 %s461_s6, 4  ;;  %s549_s15 = sshll.u32 %s545_s21, 4  ;;  %s548_s8 = int_to_ptr.vmem [resolvable:$true] %s547_s8  ;;  %s550_s15 = int_to_ptr.hbm [resolvable:$true] %s549_s15 }
  0x44   : > { %v502_v7 = vperm.slane %v477_v5, 0  ;;  %v503_v8 = vperm.slane %v477_v5, 1  ;;  %v479_v9 = vand.u32 2147483647, %v478_v3  ;;  %s1428_s1 = sld [smem:[#allocation27_spill]]  ;;  %s532_s29 = scalar_lea.sflag [#allocation4], %s1320_s13 }
  0x45   : > { %v500_v11 = vand.u32 2147483647, %v499_v6  ;;  %s1052_s7 = sshra.s32 %s550_s15, 4  ;;  %s1058_s20 = scalar_lea.hbm %s1402_s5, 2  ;;  %s1053_s7 = int_to_ptr.hbm [resolvable:$true] %s1052_s7 }
  0x46   : > { %v504_v10 = vrot.slane %v503_v8, 4  ;;  %481 = vst [vmem:[#allocation1] ss:$4 sm:$0xff] %v479_v9  ;;  %s1054_s26 = scalar_lea.hbm %s1053_s7, 1  ;;  %p1059_p7 = scmp.lt.s32.totalorder %s1053_s7, %s1402_s5 }
  0x47   : > { %p1055_p4 = scmp.ne.s32.totalorder %s1053_s7, %s1054_s26  ;;  %p1060_p8 = scmp.lt.s32.totalorder %s1058_s20, %s1054_s26 }
  0x48   : > { %v506_v12 = vsel %vm505_vm0, %v502_v7, %v504_v10 }
  0x49   : > { %v508_v13 = vmul.f32 %v506_v12, %v500_v11  ;;  %p1056_p5 = pnand %p1055_p4, %p1252_p9  ;;  %p1061_p10 = por %p1060_p8, %p1059_p7 }
  0x4a   : > { %s559_s2 = scalar_lea.hbm %s1428_s1, %s1152_s24 }
  0x4b   : > { %p1057_p6 = pneg %p1056_p5 }
  0x4d   : > { %v482_v14 = vld.sshfl [vmem:[#allocation1] sm:$0xff pattern:$0x73625140]  ;;  %v483_v15 = vld.sshfl [vmem:[#allocation1 + $0x8] sm:$0xff pattern:$0x73625140]  ;;  %p1062_p13 = pnand %p1061_p10, %p1057_p6 }
  0x4e   : > { %v487_v16 = vsel %vm486_vm1, %v482_v14, 0.0  ;;  %v488_v17 = vsel %vm486_vm1, %v483_v15, 0.0  ;;  %510 = vst [vmem:[#allocation1] ss:$2 sm:$0xff] %v508_v13 }
  0x4f   : > { %v489_v18 = vadd.f32 %v488_v17, %v487_v16 }
  0x51   : > { %490 = vadd.xlane.f32.xlu0 %v489_v18 }
  0x55   : > { %v511_v19 = vld.sshfl [vmem:[#allocation1] sm:$0xff pattern:$0x75316420]  ;;  %v512_v20 = vld.sshfl [vmem:[#allocation1 + $0x8] sm:$0xff pattern:$0x75316420] }
  0x56   : > { %v515_v21 = vsel %vm505_vm0, %v511_v19, 0.0  ;;  %v516_v22 = vsel %vm505_vm0, %v512_v20, 0.0 }
  0x57   : > { %v517_v23 = vadd.f32 %v516_v22, %v515_v21 }
  0x59   : > { %518 = vadd.xlane.f32.xlu0 %v517_v23 }
  0xc4   : > { %v491_v24 = vpop.xlane.xlu0 %490 }
  0xc5   : > { %v492_v25 = vrot.slane %v491_v24, 4 }
  0xc7   : > { %v493_v26 = vadd.f32 %v492_v25, %v491_v24 }
  0xc9   : > { %v494_v27 = vrot.slane %v493_v26, 2 }
  0xcb   : > { %v495_v28 = vadd.f32 %v494_v27, %v493_v26 }
  0xcc   : > { %v519_v29 = vpop.xlane.xlu0 %518 }
  0xcd   : > { %v520_v30 = vrot.slane %v519_v29, 4  ;;  %v496_v31 = vrot.slane %v495_v28, 1 }
  0xcf   : > { %v521_v32 = vadd.f32 %v520_v30, %v519_v29  ;;  %v497_v33 = vadd.f32 %v496_v31, %v495_v28 }
  0xd1   : > { %v522_v34 = vrot.slane %v521_v32, 2  ;;  %797 = vpush %v497_v33 }
  0xd3   : > { %v523_v35 = vadd.f32 %v522_v34, %v521_v32 }
  0xd5   : > { %v524_v36 = vrot.slane %v523_v35, 1 }
  0xd7   : > { %v525_v37 = vadd.f32 %v524_v36, %v523_v35 }
  0xd9   : > { %799 = vpush %v525_v37 }
 0x102   : > { %s798_s14 = spop %797 }
 0x103   : > { %v527_v38 = vstv %s798_s14 }
 0x104   : > { %528 = vst [vmem:[%s461_s6] sm:$0x1] %v527_v38 }
 0x105   : > { %1065 = shalt.err (!%p1062_p13)
}
 0x106   : > { %811 = dma.vmem_to_hbm [thread:$0]  (%p1252_p9), %s548_s8, 16, %s550_s15, %s532_s29  }
 0x107   : > { %s467_s24 = scalar_lea.vmem [#allocation12], %s1320_s13  ;;  %s563_s27 = sshll.u32 %s559_s2, 4  ;;  %s564_s27 = int_to_ptr.hbm [resolvable:$true] %s563_s27 }
 0x108   : > { %s561_s12 = sshll.u32 %s467_s24, 4  ;;  %s536_s9 = scalar_lea.sflag [#allocation13], %s1320_s13  ;;  %s562_s12 = int_to_ptr.vmem [resolvable:$true] %s561_s12 }
 0x109   : > { %s1080_s17 = sshra.s32 %s564_s27, 4  ;;  %s1086_s8 = scalar_lea.hbm %s1428_s1, 2  ;;  %s1081_s17 = int_to_ptr.hbm [resolvable:$true] %s1080_s17 }
 0x10a   : > { %s800_s28 = spop %799  ;;  %s1082_s21 = scalar_lea.hbm %s1081_s17, 1 }
 0x10b   : > { %v529_v39 = vstv %s800_s28  ;;  %p1083_p0 = scmp.ne.s32.totalorder %s1081_s17, %s1082_s21  ;;  %p1087_p3 = scmp.lt.s32.totalorder %s1081_s17, %s1428_s1 }
 0x10c   : > { %530 = vst [vmem:[%s467_s24] sm:$0x1] %v529_v39  ;;  %p1088_p4 = scmp.lt.s32.totalorder %s1086_s8, %s1082_s21 }
 0x10d   : > { %p1084_p1 = pnand %p1083_p0, %p1252_p9 }
 0x10e   : > { %p1089_p5 = por %p1088_p4, %p1087_p3 }
 0x10f   : > { %p1085_p2 = pneg %p1084_p1 }
 0x111   : > { %p1090_p6 = pnand %p1089_p5, %p1085_p2 }
 0x113   : > { %1093 = shalt.err (!%p1090_p6)
}
 0x114   : > { %812 = dma.vmem_to_hbm [thread:$0]  (%p1252_p9), %s562_s12, 16, %s564_s27, %s536_s9  }
 0x115 PF: > { %s1429_s13 = sld [smem:[#allocation19_spill]]  ;;  %p832_p7 = pnand %p770_p12, %p1259_p11 }
 0x116   : > { %s1431_s2 = sld [smem:[#allocation21_spill]] }
 0x117   : > { %p833_p8 = pneg %p832_p7 }
 0x11b   : > { %s575_s29 = sand.u32 1, %s1429_s13  }
 0x11c   : > { %s576_s7 = scalar_lea.sflag [#allocation4], %s575_s29 }
 0x11d   : > { %1131 = dma.done.wait (%p833_p8), %s576_s7, 16  }
 0x11e   : > { %1133 = vsyncadd (%p833_p8), %s576_s7, 4294967280  ;;  %s585_s26 = scalar_lea.sflag [#allocation13], %s575_s29 }
 0x11f   : > { %1135 = dma.done.wait (%p833_p8), %s585_s26, 16  }
 0x120   : > { %1137 = vsyncadd (%p833_p8), %s585_s26, 4294967280  ;;  %s32_s26 = sadd.s32 1, %s1431_s2   ;;  %s1432_s10 = sld [smem:[#allocation20_spill]] }
 0x121   : > { %p29_p10 = scmp.ge.s32.totalorder %s32_s26, 4   ;;  %s1433_s23 = sld [smem:[#allocation23_spill]] }
 0x122   : > { %s1434_s16 = sld [smem:[#allocation22_spill]]  ;;  %s1435_s21 = smov %s1144_s22 }
 0x123   : > { %s1437_s24 = smov %s1156_s25 }
 0x124   :  { %31 = sbr.rel (!%p29_p10) target bundleno = 16 (0x10), region = 150 }
 0x126   : > { %s1436_s22 = smov %s1432_s10 }
 0x128   : > { %s1438_s25 = smov %s1434_s16 }
 0x129   :  { %590 = vsyncpa [#allocation3], 1 }
 0x12a   :  { %592 = vsyncpa [#allocation3 + $0x1], 1 }
 0x12b   :  { %593 = vsyncpa [#allocation6], 1 }
 0x12c   :  { %595 = vsyncpa [#allocation6 + $0x1], 1 }
 0x12d   :  { %596 = vsyncpa [#allocation9], 1 }
 0x12e   :  { %598 = vsyncpa [#allocation9 + $0x1], 1 }
 0x12f   :  { %599 = vsyncpa [#allocation4], 1 }
 0x130   :  { %601 = vsyncpa [#allocation4 + $0x1], 1 }
 0x131   :  { %602 = vsyncpa [#allocation13], 1 }
 0x132   :  { %604 = vsyncpa [#allocation13 + $0x1], 1 }

</bundles_post_ra>
